<compile_context>
chip_gen: v7x
topology: tpu7x:2x2x1
jax: 0.10.0
libtpu: 0.0.40
codegen_flags: <defaults>
</compile_context>

<pallas_src>
import jax
import jax.numpy as jnp
from jax.experimental import pallas as pl
from jax.experimental.pallas import tpu as pltpu

CHUNK = 32          # sublane rows per inner-loop chunk (32x128 f32 = 4 vregs/feature)
MAX_S_BLK = 2048    # max sublane rows per grid step (4 MiB in+out per step)

# Packed-parameter layout (f32[32], embedding pre-folded into fc1/2/3 biases):
#   [0:2]  fc1 w[:, :2]     [2]  fc1 b + w[:,2:]@emb
#   [3:5]  fc2 w[:, :2]     [5]  fc2 b + w[:,2:]@emb
#   [6:8]  fc3 w[:, :2]     [8]  fc3 b + w[:,2:]@emb
#   [9:15] fc4 w (2,3) row-major   [15:17] fc4 b
#   [17:21] fc5 w (2,2) row-major  [21:23] fc5 b
#   [23:32] padding


def neuron_bnn_kernel(p_ref, x_ref, o_ref):
    # p_ref: SMEM f32[32] packed params (scalar-prefetched)
    # x_ref: VMEM (2, S_BLK, 128) feature-major inputs  [lambda, z]
    # o_ref: VMEM (2, S_BLK, 128) feature-major softmax output
    # Hoist every scalar read (and the fc5 difference fold) out of the loop.
    w1a, w1b, b1 = p_ref[0], p_ref[1], p_ref[2]
    w2a, w2b, b2 = p_ref[3], p_ref[4], p_ref[5]
    w3a, w3b, b3 = p_ref[6], p_ref[7], p_ref[8]
    w4_00, w4_01, w4_02 = p_ref[9], p_ref[10], p_ref[11]
    w4_10, w4_11, w4_12 = p_ref[12], p_ref[13], p_ref[14]
    b4_0, b4_1 = p_ref[15], p_ref[16]
    # 2-class softmax only needs l0 - l1:  d = dw0*g0 + dw1*g1 + db
    dw0 = p_ref[17] - p_ref[19]
    dw1 = p_ref[18] - p_ref[20]
    db = p_ref[21] - p_ref[22]

    s_blk = x_ref.shape[1]
    n_chunks = s_blk // CHUNK

    @pl.loop(0, n_chunks)
    def _(c):
        r0 = pl.multiple_of(c * CHUNK, CHUNK)
        x0 = x_ref[0, pl.ds(r0, CHUNK), :]          # lambda  (CHUNK, 128)
        x1 = x_ref[1, pl.ds(r0, CHUNK), :]          # z       (CHUNK, 128)

        # fc1/fc2/fc3 with embedding folded into the bias: 2 FMAs each + ReLU.
        h1 = jnp.maximum(w1a * x0 + w1b * x1 + b1, 0.0)
        h2 = jnp.maximum(w2a * x0 + w2b * x1 + b2, 0.0)
        h3 = jnp.maximum(w3a * x0 + w3b * x1 + b3, 0.0)

        # fc4: (3 -> 2), unrolled VPU FMAs + ReLU.
        g0 = jnp.maximum(w4_00 * h1 + w4_01 * h2 + w4_02 * h3 + b4_0, 0.0)
        g1 = jnp.maximum(w4_10 * h1 + w4_11 * h2 + w4_12 * h3 + b4_1, 0.0)

        # fc5 + 2-class softmax in sigmoid form (inf-safe, exact divide).
        d = dw0 * g0 + dw1 * g1 + db                # l0 - l1
        p1 = 1.0 / (1.0 + jnp.exp(d))               # softmax prob of class 1
        o_ref[0, pl.ds(r0, CHUNK), :] = 1.0 - p1
        o_ref[1, pl.ds(r0, CHUNK), :] = p1


def neuron_bnn_forward_batched(x_fm, packed_params, *, max_s_blk=MAX_S_BLK):
    """Batched forward, feature-major end to end.

    x_fm: (2, B) f32, rows = [lambda, z].  Returns (2, B) softmax probabilities
    (row 0 = class 0, row 1 = class 1).
    """
    B = x_fm.shape[1]
    lanes_per_chunk = CHUNK * 128
    n_chunks_total = pl.cdiv(B, lanes_per_chunk)
    chunks_per_step = min(max_s_blk // CHUNK, n_chunks_total)
    s_blk = chunks_per_step * CHUNK
    grid_len = pl.cdiv(n_chunks_total, chunks_per_step)
    b_pad = grid_len * s_blk * 128

    x_fm = x_fm.astype(jnp.float32)
    if b_pad != B:
        # TODO(synk): a masked/BoundedSlice last block would avoid this pad copy.
        x_fm = jnp.pad(x_fm, ((0, 0), (0, b_pad - B)))
    x3d = x_fm.reshape(2, grid_len * s_blk, 128)     # free (contiguous) reshape

    out3d = pl.pallas_call(
        neuron_bnn_kernel,
        out_shape=jax.ShapeDtypeStruct((2, grid_len * s_blk, 128), jnp.float32),
        grid_spec=pltpu.PrefetchScalarGridSpec(
            num_scalar_prefetch=1,
            grid=(grid_len,),
            in_specs=[pl.BlockSpec((2, s_blk, 128), lambda i, p: (0, i, 0))],
            out_specs=pl.BlockSpec((2, s_blk, 128), lambda i, p: (0, i, 0)),
        ),
        compiler_params=pltpu.CompilerParams(
            dimension_semantics=("parallel",)),
    )(packed_params, x3d)

    out_fm = out3d.reshape(2, b_pad)
    if b_pad != B:
        out_fm = out_fm[:, :B]
    return out_fm                                     # (2, B) feature-major


def neuron_bnn_forward(x, packed_params):
    """Original single-sample module semantics: x (2,) -> (2,)."""
    out_fm = neuron_bnn_forward_batched(x.reshape(2, 1), packed_params)
    return out_fm[:, 0]


# ----------------------------------------------------------------------------
# Parameter construction (PyTorch nn.Linear conventions: weight (out, in)).
# ----------------------------------------------------------------------------
def _torch_linear_init(key, fan_in, fan_out):
    kw, kb = jax.random.split(key)
    bound = fan_in ** -0.5
    w = jax.random.uniform(kw, (fan_out, fan_in), jnp.float32, -bound, bound)
    b = jax.random.uniform(kb, (fan_out,), jnp.float32, -bound, bound)
    return w, b


def make_params(key):
    k1, k2, k3, k4, k5 = jax.random.split(key, 5)
    return (
        _torch_linear_init(k1, 4, 1),   # fc1
        _torch_linear_init(k2, 4, 1),   # fc2
        _torch_linear_init(k3, 4, 1),   # fc3
        _torch_linear_init(k4, 3, 2),   # fc4
        _torch_linear_init(k5, 2, 2),   # fc5
    )


def pack_params(params, embedding):
    """Pack all weights into f32[32]; embedding is folded into fc1/2/3 biases."""
    (w1, b1), (w2, b2), (w3, b3), (w4, b4), (w5, b5) = params
    emb = embedding.astype(jnp.float32).reshape(2)

    def fold(w, b):
        return w[:, :2].reshape(-1), (b + w[:, 2:] @ emb).reshape(-1)

    w1f, b1f = fold(w1, b1)
    w2f, b2f = fold(w2, b2)
    w3f, b3f = fold(w3, b3)
    flat = jnp.concatenate([
        w1f, b1f,                       # 0..1, 2
        w2f, b2f,                       # 3..4, 5
        w3f, b3f,                       # 6..7, 8
        w4.reshape(-1), b4.reshape(-1), # 9..14, 15..16
        w5.reshape(-1), b5.reshape(-1), # 17..20, 21..22
    ]).astype(jnp.float32)
    return jnp.pad(flat, (0, 32 - flat.shape[0]))


# ----------------------------------------------------------------------------
# Pure-JAX reference matching the PyTorch module.
# ----------------------------------------------------------------------------
def reference_forward_batched(xz, embedding, params):
    (w1, b1), (w2, b2), (w3, b3), (w4, b4), (w5, b5) = params
    B = xz.shape[0]
    x = jnp.concatenate(
        [xz, jnp.broadcast_to(embedding.reshape(1, 2), (B, 2))], axis=1)
    h1 = jnp.maximum(x @ w1.T + b1, 0.0)
    h2 = jnp.maximum(x @ w2.T + b2, 0.0)
    h3 = jnp.maximum(x @ w3.T + b3, 0.0)
    h = jnp.concatenate([h1, h2, h3], axis=1)
    g = jnp.maximum(h @ w4.T + b4, 0.0)
    logits = g @ w5.T + b5
    return jax.nn.softmax(logits, axis=-1)


if __name__ == "__main__":
    key = jax.random.PRNGKey(0)
    kx, kp = jax.random.split(key)

    # Small deterministic batch of (lambda, z) pairs, feature-major; the
    # bayesian embedding is [1, 0] as in the module.
    B = 256
    x_fm = jax.random.normal(kx, (2, B), jnp.float32)
    embedding = jnp.array([1.0, 0.0], jnp.float32)

    params = make_params(kp)
    packed = pack_params(params, embedding)

    # Batched, feature-major path.
    out_fm = neuron_bnn_forward_batched(x_fm, packed)
    out_fm = jax.block_until_ready(out_fm)
    ref = reference_forward_batched(x_fm.T, embedding, params)
    assert out_fm.shape == (2, B)
    assert jnp.allclose(out_fm.T, ref, atol=1e-5, rtol=1e-5), (out_fm.T[:4], ref[:4])

    # Original single-sample module semantics.
    out1 = neuron_bnn_forward(x_fm[:, 0], packed)
    out1 = jax.block_until_ready(out1)
    assert out1.shape == (2,)
    assert jnp.allclose(out1, ref[0], atol=1e-5, rtol=1e-5), (out1, ref[0])

    print("KERNEL_OK")
</pallas_src>

<mosaic_0001>
module attributes {stable_mosaic.version = 11 : i64} {
  func.func @neuron_bnn_kernel(%arg0: i32, %arg1: memref<32xf32, #tpu.memory_space<smem>>, %arg2: memref<2x32x128xf32, #tpu.memory_space<vmem>>, %arg3: memref<2x32x128xf32, #tpu.memory_space<vmem>>) attributes {dimension_semantics = [#tpu.dimension_semantics<parallel>], iteration_bounds = array<i64: 1>, scalar_prefetch = 1 : i64, scratch_operands = 0 : i64, tpu.core_type = #tpu.core_type<tc>, window_params = [{transform_indices = @transform_0, window_bounds = array<i64: 2, 32, 128>}, {transform_indices = @transform_1, window_bounds = array<i64: 2, 32, 128>}]} {
    %c0 = arith.constant 0 : index
    %0 = memref.load %arg1[%c0] : memref<32xf32, #tpu.memory_space<smem>>
    %c1 = arith.constant 1 : index
    %1 = memref.load %arg1[%c1] : memref<32xf32, #tpu.memory_space<smem>>
    %c2 = arith.constant 2 : index
    %2 = memref.load %arg1[%c2] : memref<32xf32, #tpu.memory_space<smem>>
    %c3 = arith.constant 3 : index
    %3 = memref.load %arg1[%c3] : memref<32xf32, #tpu.memory_space<smem>>
    %c4 = arith.constant 4 : index
    %4 = memref.load %arg1[%c4] : memref<32xf32, #tpu.memory_space<smem>>
    %c5 = arith.constant 5 : index
    %5 = memref.load %arg1[%c5] : memref<32xf32, #tpu.memory_space<smem>>
    %c6 = arith.constant 6 : index
    %6 = memref.load %arg1[%c6] : memref<32xf32, #tpu.memory_space<smem>>
    %c7 = arith.constant 7 : index
    %7 = memref.load %arg1[%c7] : memref<32xf32, #tpu.memory_space<smem>>
    %c8 = arith.constant 8 : index
    %8 = memref.load %arg1[%c8] : memref<32xf32, #tpu.memory_space<smem>>
    %c9 = arith.constant 9 : index
    %9 = memref.load %arg1[%c9] : memref<32xf32, #tpu.memory_space<smem>>
    %c10 = arith.constant 10 : index
    %10 = memref.load %arg1[%c10] : memref<32xf32, #tpu.memory_space<smem>>
    %c11 = arith.constant 11 : index
    %11 = memref.load %arg1[%c11] : memref<32xf32, #tpu.memory_space<smem>>
    %c12 = arith.constant 12 : index
    %12 = memref.load %arg1[%c12] : memref<32xf32, #tpu.memory_space<smem>>
    %c13 = arith.constant 13 : index
    %13 = memref.load %arg1[%c13] : memref<32xf32, #tpu.memory_space<smem>>
    %c14 = arith.constant 14 : index
    %14 = memref.load %arg1[%c14] : memref<32xf32, #tpu.memory_space<smem>>
    %c15 = arith.constant 15 : index
    %15 = memref.load %arg1[%c15] : memref<32xf32, #tpu.memory_space<smem>>
    %c16 = arith.constant 16 : index
    %16 = memref.load %arg1[%c16] : memref<32xf32, #tpu.memory_space<smem>>
    %c17 = arith.constant 17 : index
    %17 = memref.load %arg1[%c17] : memref<32xf32, #tpu.memory_space<smem>>
    %c19 = arith.constant 19 : index
    %18 = memref.load %arg1[%c19] : memref<32xf32, #tpu.memory_space<smem>>
    %19 = arith.subf %17, %18 : f32
    %c18 = arith.constant 18 : index
    %20 = memref.load %arg1[%c18] : memref<32xf32, #tpu.memory_space<smem>>
    %c20 = arith.constant 20 : index
    %21 = memref.load %arg1[%c20] : memref<32xf32, #tpu.memory_space<smem>>
    %22 = arith.subf %20, %21 : f32
    %c21 = arith.constant 21 : index
    %23 = memref.load %arg1[%c21] : memref<32xf32, #tpu.memory_space<smem>>
    %c22 = arith.constant 22 : index
    %24 = memref.load %arg1[%c22] : memref<32xf32, #tpu.memory_space<smem>>
    %25 = arith.subf %23, %24 : f32
    %c0_i32 = arith.constant 0 : i32
    %c1_i32 = arith.constant 1 : i32
    %26 = arith.muli %c0_i32, %c1_i32 : i32
    %c0_i32_0 = arith.constant 0 : i32
    %27 = arith.addi %c0_i32_0, %26 : i32
    %c32_i32 = arith.constant 32 : i32
    %28 = arith.muli %27, %c32_i32 : i32
    %29 = tpu.assume_multiple %28, 32 : i32
    %c0_1 = arith.constant 0 : index
    %30 = arith.index_cast %29 : i32 to index
    %c0_2 = arith.constant 0 : index
    %31 = vector.load %arg2[%c0_1, %30, %c0_2] : memref<2x32x128xf32, #tpu.memory_space<vmem>>, vector<1x32x128xf32>
    %32 = vector.shape_cast %31 : vector<1x32x128xf32> to vector<32x128xf32>
    %c1_3 = arith.constant 1 : index
    %33 = arith.index_cast %29 : i32 to index
    %c0_4 = arith.constant 0 : index
    %34 = vector.load %arg2[%c1_3, %33, %c0_4] : memref<2x32x128xf32, #tpu.memory_space<vmem>>, vector<1x32x128xf32>
    %35 = vector.shape_cast %34 : vector<1x32x128xf32> to vector<32x128xf32>
    %36 = vector.broadcast %0 : f32 to vector<32x128xf32>
    %37 = arith.mulf %36, %32 : vector<32x128xf32>
    %38 = vector.broadcast %1 : f32 to vector<32x128xf32>
    %39 = arith.mulf %38, %35 : vector<32x128xf32>
    %40 = arith.addf %37, %39 : vector<32x128xf32>
    %41 = vector.broadcast %2 : f32 to vector<32x128xf32>
    %42 = arith.addf %40, %41 : vector<32x128xf32>
    %cst = arith.constant 0.000000e+00 : f32
    %43 = vector.broadcast %cst : f32 to vector<32x128xf32>
    %44 = arith.maximumf %42, %43 : vector<32x128xf32>
    %45 = vector.broadcast %3 : f32 to vector<32x128xf32>
    %46 = arith.mulf %45, %32 : vector<32x128xf32>
    %47 = vector.broadcast %4 : f32 to vector<32x128xf32>
    %48 = arith.mulf %47, %35 : vector<32x128xf32>
    %49 = arith.addf %46, %48 : vector<32x128xf32>
    %50 = vector.broadcast %5 : f32 to vector<32x128xf32>
    %51 = arith.addf %49, %50 : vector<32x128xf32>
    %cst_5 = arith.constant 0.000000e+00 : f32
    %52 = vector.broadcast %cst_5 : f32 to vector<32x128xf32>
    %53 = arith.maximumf %51, %52 : vector<32x128xf32>
    %54 = vector.broadcast %6 : f32 to vector<32x128xf32>
    %55 = arith.mulf %54, %32 : vector<32x128xf32>
    %56 = vector.broadcast %7 : f32 to vector<32x128xf32>
    %57 = arith.mulf %56, %35 : vector<32x128xf32>
    %58 = arith.addf %55, %57 : vector<32x128xf32>
    %59 = vector.broadcast %8 : f32 to vector<32x128xf32>
    %60 = arith.addf %58, %59 : vector<32x128xf32>
    %cst_6 = arith.constant 0.000000e+00 : f32
    %61 = vector.broadcast %cst_6 : f32 to vector<32x128xf32>
    %62 = arith.maximumf %60, %61 : vector<32x128xf32>
    %63 = vector.broadcast %9 : f32 to vector<32x128xf32>
    %64 = arith.mulf %63, %44 : vector<32x128xf32>
    %65 = vector.broadcast %10 : f32 to vector<32x128xf32>
    %66 = arith.mulf %65, %53 : vector<32x128xf32>
    %67 = arith.addf %64, %66 : vector<32x128xf32>
    %68 = vector.broadcast %11 : f32 to vector<32x128xf32>
    %69 = arith.mulf %68, %62 : vector<32x128xf32>
    %70 = arith.addf %67, %69 : vector<32x128xf32>
    %71 = vector.broadcast %15 : f32 to vector<32x128xf32>
    %72 = arith.addf %70, %71 : vector<32x128xf32>
    %cst_7 = arith.constant 0.000000e+00 : f32
    %73 = vector.broadcast %cst_7 : f32 to vector<32x128xf32>
    %74 = arith.maximumf %72, %73 : vector<32x128xf32>
    %75 = vector.broadcast %12 : f32 to vector<32x128xf32>
    %76 = arith.mulf %75, %44 : vector<32x128xf32>
    %77 = vector.broadcast %13 : f32 to vector<32x128xf32>
    %78 = arith.mulf %77, %53 : vector<32x128xf32>
    %79 = arith.addf %76, %78 : vector<32x128xf32>
    %80 = vector.broadcast %14 : f32 to vector<32x128xf32>
    %81 = arith.mulf %80, %62 : vector<32x128xf32>
    %82 = arith.addf %79, %81 : vector<32x128xf32>
    %83 = vector.broadcast %16 : f32 to vector<32x128xf32>
    %84 = arith.addf %82, %83 : vector<32x128xf32>
    %cst_8 = arith.constant 0.000000e+00 : f32
    %85 = vector.broadcast %cst_8 : f32 to vector<32x128xf32>
    %86 = arith.maximumf %84, %85 : vector<32x128xf32>
    %87 = vector.broadcast %19 : f32 to vector<32x128xf32>
    %88 = arith.mulf %87, %74 : vector<32x128xf32>
    %89 = vector.broadcast %22 : f32 to vector<32x128xf32>
    %90 = arith.mulf %89, %86 : vector<32x128xf32>
    %91 = arith.addf %88, %90 : vector<32x128xf32>
    %92 = vector.broadcast %25 : f32 to vector<32x128xf32>
    %93 = arith.addf %91, %92 : vector<32x128xf32>
    %94 = math.exp %93 : vector<32x128xf32>
    %cst_9 = arith.constant 1.000000e+00 : f32
    %95 = vector.broadcast %cst_9 : f32 to vector<32x128xf32>
    %96 = arith.addf %95, %94 : vector<32x128xf32>
    %cst_10 = arith.constant 1.000000e+00 : f32
    %97 = vector.broadcast %cst_10 : f32 to vector<32x128xf32>
    %98 = arith.divf %97, %96 : vector<32x128xf32>
    %cst_11 = arith.constant 1.000000e+00 : f32
    %99 = vector.broadcast %cst_11 : f32 to vector<32x128xf32>
    %100 = arith.subf %99, %98 : vector<32x128xf32>
    %c0_12 = arith.constant 0 : index
    %101 = arith.index_cast %29 : i32 to index
    %c0_13 = arith.constant 0 : index
    %102 = vector.load %arg3[%c0_12, %101, %c0_13] : memref<2x32x128xf32, #tpu.memory_space<vmem>>, vector<1x32x128xf32>
    %103 = vector.shape_cast %102 : vector<1x32x128xf32> to vector<32x128xf32>
    %104 = vector.shape_cast %100 : vector<32x128xf32> to vector<1x32x128xf32>
    tpu.vector_store %arg3[%c0_12, %101, %c0_13], %104 {strides = array<i32>} : memref<2x32x128xf32, #tpu.memory_space<vmem>>, vector<1x32x128xf32>,
    %c1_14 = arith.constant 1 : index
    %105 = arith.index_cast %29 : i32 to index
    %c0_15 = arith.constant 0 : index
    %106 = vector.load %arg3[%c1_14, %105, %c0_15] : memref<2x32x128xf32, #tpu.memory_space<vmem>>, vector<1x32x128xf32>
    %107 = vector.shape_cast %106 : vector<1x32x128xf32> to vector<32x128xf32>
    %108 = vector.shape_cast %98 : vector<32x128xf32> to vector<1x32x128xf32>
    tpu.vector_store %arg3[%c1_14, %105, %c0_15], %108 {strides = array<i32>} : memref<2x32x128xf32, #tpu.memory_space<vmem>>, vector<1x32x128xf32>,
    %c1_i32_16 = arith.constant 1 : i32
    return
  }
  func.func @transform_0(%arg0: i32, %arg1: memref<32xf32, #tpu.memory_space<smem>>) -> (i32, i32, i32) {
    %c0_i32 = arith.constant 0 : i32
    %c0_i32_0 = arith.constant 0 : i32
    %c0_i32_1 = arith.constant 0 : i32
    return %c0_i32, %arg0, %c0_i32_0 : i32, i32, i32
  }
  func.func @transform_1(%arg0: i32, %arg1: memref<32xf32, #tpu.memory_space<smem>>) -> (i32, i32, i32) {
    %c0_i32 = arith.constant 0 : i32
    %c0_i32_0 = arith.constant 0 : i32
    %c0_i32_1 = arith.constant 0 : i32
    return %c0_i32, %arg0, %c0_i32_0 : i32, i32, i32
  }
}

</mosaic_0001>

<bundles_post_ra>
// kernel: tpu_custom_call.1
= control target key start
LH: loop header
LB: loop body
LE: loop exit
PB: predicated region body
PF: predicated region fallthrough
CT: control target
= control target key end

     0   :  { %s598_s0 = inlined_call_operand.hbm [shape: f32[32], index: 0, kind: input, shape index: {}]   ;;  %s599_s1 = inlined_call_operand.hbm [shape: f32[2,32,128], index: 1, kind: input, shape index: {}]   ;;  %s600_s2 = inlined_call_operand.hbm [shape: f32[2,32,128], index: 2, kind: output, shape index: {}]  }
   0x1   :  { %s311_s11 = scalar_lea.hbm %s598_s0, 16 }
   0x2   :  { %p312_p0 = scmp.ne.s32.totalorder %s598_s0, %s311_s11  ;;  %p315_p1 = scmp.lt.u32.totalorder %s311_s11, %s598_s0 }
   0x4   :  { %p317_p2 = pnand %p315_p1, %p312_p0 }
   0x6   :  { %320 = shalt.err (!%p317_p2)  }
   0x7   :  { %s371_s16 = smov [#allocation3]  }
   0x8   :  { %8 = dma.hbm_to_smem %s598_s0, 16, %s371_s16, [#allocation2] }
   0x9   :  { %365 = dma.done.wait [#allocation2], 16 }
   0xa   :  { %366 = vsyncadd [#allocation2], 4294967280 }
   0xb   :  { %10 = sfence }
   0xc   :  { %11 = vsyncpa [#allocation5], 0 }
   0xd   :  { %12 = vsyncpa [#allocation6], 0  ;;  %s372_s19 = smov [#allocation4]   ;;  %s321_s23 = scalar_lea.hbm %s599_s1, 1024 }
   0xe   :  { %s18_s20 = sshll.u32 %s372_s19, 4  ;;  %p322_p3 = scmp.ne.s32.totalorder %s599_s1, %s321_s23  ;;  %s19_s20 = int_to_ptr.vmem [resolvable:$true] %s18_s20 }
   0xf   :  { %p325_p4 = scmp.lt.u32.totalorder %s321_s23, %s599_s1 }
  0x11   :  { %p327_p5 = pnand %p325_p4, %p322_p3 }
  0x13   :  { %330 = shalt.err (!%p327_p5)
}
  0x14   :  { %s331_s0 = scalar_lea.vmem %s19_s20, 1024  ;;  %p336_p7 = scmp.lt.s32.totalorder %s19_s20, %s19_s20 }
  0x15   :  { %p332_p6 = scmp.ne.s32.totalorder %s19_s20, %s331_s0  ;;  %p337_p8 = scmp.lt.s32.totalorder %s331_s0, %s331_s0 }
  0x17   :  { %p338_p9 = por %p337_p8, %p336_p7 }
  0x19   :  { %p339_p10 = pnand %p338_p9, %p332_p6 }
  0x1b   :  { %342 = shalt.err (!%p339_p10)
}
  0x1c   :  { %s373_s28 = smov 128   ;;  %s374_s29 = smov 8  }
  0x1d   :  { %24 = dma.hbm_to_vmem [thread:$0]  %s599_s1, 1024, %s19_s20, [#allocation5], %s373_s28, %s373_s28, %s374_s29  }
  0x1e   :  { %367 = dma.done.wait [#allocation5], 1024  }
  0x1f   :  { %368 = vsyncadd [#allocation5], 4294966272  ;;  %s28_s4 = sld [smem:[#allocation3]]  ;;  %s268_s5 = sld [smem:[#allocation3 + $0x1]]  ;;  %v54_v0 = vld [vmem:[#allocation4] sm:$0xff]  ;;  %v55_v8 = vld [vmem:[#allocation4 + $0x8] sm:$0xff] }
  0x20   :  { %s269_s6 = sld [smem:[#allocation3 + $0x2]]  ;;  %s270_s7 = sld [smem:[#allocation3 + $0x3]]  ;;  %v60_v1 = vld [vmem:[#allocation4 + $0x20] sm:$0xff]  ;;  %v61_v17 = vld [vmem:[#allocation4 + $0x28] sm:$0xff]  ;;  %v56_v50 = vld [vmem:[#allocation4 + $0x10] sm:$0xff] }
  0x21   :  { %s271_s8 = sld [smem:[#allocation3 + $0x4]]  ;;  %s272_s9 = sld [smem:[#allocation3 + $0x5]]  ;;  %v62_v55 = vld [vmem:[#allocation4 + $0x30] sm:$0xff] }
  0x22   :  { %s273_s10 = sld [smem:[#allocation3 + $0x6]]  ;;  %s274_s11 = sld [smem:[#allocation3 + $0x7]] }
  0x23   :  { %s418_s12 = sld [smem:[#allocation3 + $0x8]]  ;;  %s420_s13 = sld [smem:[#allocation3 + $0x9]] }
  0x24   :  { %s422_s14 = sld [smem:[#allocation3 + $0xa]]  ;;  %s424_s15 = sld [smem:[#allocation3 + $0xb]] }
  0x25   :  { %s426_s16 = sld [smem:[#allocation3 + $0xc]]  ;;  %s428_s1 = sld [smem:[#allocation3 + $0xd]]  ;;  %v430_v2 = vstv %s28_s4  ;;  %v432_v3 = vstv %s268_s5 }
  0x26   :  { %s434_s17 = sld [smem:[#allocation3 + $0xe]]  ;;  %s436_s18 = sld [smem:[#allocation3 + $0xf]]  ;;  %v65_v4 = vmul.f32 %v430_v2, %v54_v0  ;;  %v70_v5 = vmul.f32 %v432_v3, %v60_v1  ;;  %v440_v6 = vstv %s269_s6  ;;  %v442_v7 = vstv %s270_s7 }
  0x27   :  { %s444_s19 = sld [smem:[#allocation3 + $0x10]]  ;;  %s446_s20 = sld [smem:[#allocation3 + $0x11]]  ;;  %v88_v9 = vmul.f32 %v442_v7, %v54_v0  ;;  %v449_v10 = vstv %s271_s8  ;;  %v451_v11 = vstv %s272_s9  ;;  %v66_v12 = vmul.f32 %v430_v2, %v55_v8 }
  0x28   :  { %s454_s21 = sld [smem:[#allocation3 + $0x13]]  ;;  %s456_s22 = sld [smem:[#allocation3 + $0x12]]  ;;  %v74_v13 = vadd.f32 %v70_v5, %v65_v4  ;;  %v93_v14 = vmul.f32 %v449_v10, %v60_v1  ;;  %v459_v15 = vstv %s273_s10  ;;  %v461_v16 = vstv %s274_s11 }
  0x29   :  { %s463_s23 = sld [smem:[#allocation3 + $0x14]]  ;;  %s465_s24 = sld [smem:[#allocation3 + $0x15]]  ;;  %v111_v18 = vmul.f32 %v459_v15, %v54_v0  ;;  %v116_v19 = vmul.f32 %v461_v16, %v60_v1  ;;  %v470_v20 = vstv %s418_s12  ;;  %v473_v21 = vstv %s420_s13 }
  0x2a   :  { %s475_s25 = sld [smem:[#allocation3 + $0x16]]  ;;  %v79_v22 = vadd.f32 %v440_v6, %v74_v13  ;;  %v97_v23 = vadd.f32 %v93_v14, %v88_v9  ;;  %v479_v24 = vstv %s422_s14  ;;  %v482_v25 = vstv %s424_s15  ;;  %s375_s30 = smov [#allocation7]  }
  0x2b   :  { %v120_v26 = vadd.f32 %v116_v19, %v111_v18  ;;  %v485_v27 = vstv %s426_s16  ;;  %v488_v28 = vstv %s428_s1  ;;  %v71_v29 = vmul.f32 %v432_v3, %v61_v17  ;;  %s254_s3 = sshll.u32 %s375_s30, 4  ;;  %s255_s3 = int_to_ptr.vmem [resolvable:$true] %s254_s3 }
  0x2c   :  { %v83_v30 = vmax.f32 %v79_v22, 0.0  ;;  %v102_v31 = vadd.f32 %v451_v11, %v97_v23  ;;  %v493_v32 = vstv %s436_s18  ;;  %v496_v33 = vstv %s434_s17  ;;  %s343_s4 = scalar_lea.vmem %s255_s3, 1024  ;;  %p348_p12 = scmp.lt.s32.totalorder %s255_s3, %s255_s3 }
  0x2d   :  { %v125_v34 = vadd.f32 %v470_v20, %v120_v26  ;;  %v500_v35 = vstv %s444_s19  ;;  %v75_v36 = vadd.f32 %v71_v29, %v66_v12  ;;  %v89_v37 = vmul.f32 %v442_v7, %v55_v8  ;;  %p344_p11 = scmp.ne.s32.totalorder %s255_s3, %s343_s4  ;;  %p349_p13 = scmp.lt.s32.totalorder %s343_s4, %s343_s4 }
  0x2e   :  { %s47_s26 = ssub.f32 %s446_s20, %s454_s21  ;;  %v106_v38 = vmax.f32 %v102_v31, 0.0  ;;  %v134_v39 = vmul.f32 %v473_v21, %v83_v30  ;;  %v166_v40 = vmul.f32 %v485_v27, %v83_v30  ;;  %v94_v41 = vmul.f32 %v449_v10, %v61_v17  ;;  %v57_v30 = vld [vmem:[#allocation4 + $0x18] sm:$0xff] }
  0x2f   :  { %s50_s27 = ssub.f32 %s456_s22, %s463_s23  ;;  %v129_v42 = vmax.f32 %v125_v34, 0.0  ;;  %v80_v43 = vadd.f32 %v440_v6, %v75_v36  ;;  %v112_v44 = vmul.f32 %v459_v15, %v55_v8  ;;  %v117_v45 = vmul.f32 %v461_v16, %v61_v17  ;;  %p350_p0 = por %p349_p13, %p348_p12 }
  0x30   :  { %s53_s0 = ssub.f32 %s465_s24, %s475_s25  ;;  %v139_v46 = vmul.f32 %v479_v24, %v106_v38  ;;  %v171_v47 = vmul.f32 %v488_v28, %v106_v38  ;;  %v517_v48 = vstv %s47_s26  ;;  %v98_v49 = vadd.f32 %v94_v41, %v89_v37 }
  0x31   :  { %v148_v51 = vmul.f32 %v482_v25, %v129_v42  ;;  %v180_v52 = vmul.f32 %v496_v33, %v129_v42  ;;  %v521_v53 = vstv %s50_s27  ;;  %v84_v54 = vmax.f32 %v80_v43, 0.0  ;;  %v63_v42 = vld [vmem:[#allocation4 + $0x38] sm:$0xff]  ;;  %p351_p1 = pnand %p350_p0, %p344_p11 }
  0x32   :  { %v143_v56 = vadd.f32 %v139_v46, %v134_v39  ;;  %v175_v57 = vadd.f32 %v171_v47, %v166_v40  ;;  %v523_v58 = vstv %s53_s0  ;;  %v103_v59 = vadd.f32 %v451_v11, %v98_v49 }
  0x33   :  { %v121_v60 = vadd.f32 %v117_v45, %v112_v44  ;;  %v135_v61 = vmul.f32 %v473_v21, %v84_v54  ;;  %v167_v62 = vmul.f32 %v485_v27, %v84_v54  ;;  %v67_v63 = vmul.f32 %v430_v2, %v56_v50 }
  0x34   :  { %v152_v0 = vadd.f32 %v148_v51, %v143_v56  ;;  %v184_v1 = vadd.f32 %v180_v52, %v175_v57  ;;  %v107_v4 = vmax.f32 %v103_v59, 0.0  ;;  %v72_v5 = vmul.f32 %v432_v3, %v62_v55 }
  0x35   :  { %v126_v8 = vadd.f32 %v470_v20, %v121_v60  ;;  %v90_v9 = vmul.f32 %v442_v7, %v56_v50  ;;  %v95_v12 = vmul.f32 %v449_v10, %v62_v55  ;;  %v113_v13 = vmul.f32 %v459_v15, %v56_v50 }
  0x36   :  { %v157_v14 = vadd.f32 %v493_v32, %v152_v0  ;;  %v189_v17 = vadd.f32 %v500_v35, %v184_v1  ;;  %v140_v18 = vmul.f32 %v479_v24, %v107_v4  ;;  %v172_v19 = vmul.f32 %v488_v28, %v107_v4 }
  0x37   :  { %v130_v22 = vmax.f32 %v126_v8, 0.0  ;;  %v76_v23 = vadd.f32 %v72_v5, %v67_v63  ;;  %v99_v26 = vadd.f32 %v95_v12, %v90_v9  ;;  %v118_v29 = vmul.f32 %v461_v16, %v62_v55 }
  0x38   :  { %v161_v31 = vmax.f32 %v157_v14, 0.0  ;;  %v193_v34 = vmax.f32 %v189_v17, 0.0  ;;  %v144_v36 = vadd.f32 %v140_v18, %v135_v61  ;;  %v176_v37 = vadd.f32 %v172_v19, %v167_v62 }
  0x39   :  { %v149_v38 = vmul.f32 %v482_v25, %v130_v22  ;;  %v181_v39 = vmul.f32 %v496_v33, %v130_v22  ;;  %v81_v40 = vadd.f32 %v440_v6, %v76_v23  ;;  %v104_v41 = vadd.f32 %v451_v11, %v99_v26 }
  0x3a   :  { %v198_v43 = vmul.f32 %v517_v48, %v161_v31  ;;  %v203_v44 = vmul.f32 %v521_v53, %v193_v34  ;;  %v122_v45 = vadd.f32 %v118_v29, %v113_v13  ;;  %v68_v46 = vmul.f32 %v430_v2, %v57_v30 }
  0x3b   :  { %v153_v47 = vadd.f32 %v149_v38, %v144_v36  ;;  %v185_v49 = vadd.f32 %v181_v39, %v176_v37  ;;  %v85_v50 = vmax.f32 %v81_v40, 0.0  ;;  %v108_v51 = vmax.f32 %v104_v41, 0.0 }
  0x3c   :  { %v207_v52 = vadd.f32 %v203_v44, %v198_v43  ;;  %v127_v54 = vadd.f32 %v470_v20, %v122_v45  ;;  %v73_v55 = vmul.f32 %v432_v3, %v63_v42  ;;  %v91_v56 = vmul.f32 %v442_v7, %v57_v30 }
  0x3d   :  { %v158_v57 = vadd.f32 %v493_v32, %v153_v47  ;;  %v190_v59 = vadd.f32 %v500_v35, %v185_v49  ;;  %v136_v60 = vmul.f32 %v473_v21, %v85_v50  ;;  %v141_v61 = vmul.f32 %v479_v24, %v108_v51 }
  0x3e   :  { %v212_v2 = vadd.f32 %v523_v58, %v207_v52  ;;  %v131_v62 = vmax.f32 %v127_v54, 0.0  ;;  %v168_v63 = vmul.f32 %v485_v27, %v85_v50  ;;  %v173_v0 = vmul.f32 %v488_v28, %v108_v51 }
  0x3f   :  { %v162_v1 = vmax.f32 %v158_v57, 0.0  ;;  %v194_v4 = vmax.f32 %v190_v59, 0.0  ;;  %v145_v3 = vadd.f32 %v141_v61, %v136_v60  ;;  %v77_v5 = vadd.f32 %v73_v55, %v68_v46 }
  0x40   :  { %v216_v7 = vmul.f32 1.442695, %v212_v2  ;;  %v150_v8 = vmul.f32 %v482_v25, %v131_v62  ;;  %v177_v9 = vadd.f32 %v173_v0, %v168_v63  ;;  %v182_v12 = vmul.f32 %v496_v33, %v131_v62 }
  0x41   :  { %v199_v13 = vmul.f32 %v517_v48, %v162_v1  ;;  %v204_v14 = vmul.f32 %v521_v53, %v194_v4  ;;  %v82_v17 = vadd.f32 %v440_v6, %v77_v5  ;;  %v96_v18 = vmul.f32 %v449_v10, %v63_v42 }
  0x42   :  { %295 = vpow2.f32 %v216_v7  ;;  %v154_v19 = vadd.f32 %v150_v8, %v145_v3  ;;  %v186_v22 = vadd.f32 %v182_v12, %v177_v9  ;;  %v114_v23 = vmul.f32 %v459_v15, %v57_v30 }
  0x43   :  { %v208_v26 = vadd.f32 %v204_v14, %v199_v13  ;;  %v86_v29 = vmax.f32 %v82_v17, 0.0  ;;  %v100_v31 = vadd.f32 %v96_v18, %v91_v56  ;;  %v119_v34 = vmul.f32 %v461_v16, %v63_v42 }
  0x44   :  { %v159_v36 = vadd.f32 %v493_v32, %v154_v19  ;;  %v191_v37 = vadd.f32 %v500_v35, %v186_v22 }
  0x45   :  { %v213_v38 = vadd.f32 %v523_v58, %v208_v26  ;;  %v105_v6 = vadd.f32 %v451_v11, %v100_v31  ;;  %v123_v39 = vadd.f32 %v119_v34, %v114_v23  ;;  %v137_v41 = vmul.f32 %v473_v21, %v86_v29 }
  0x46   :  { %v163_v10 = vmax.f32 %v159_v36, 0.0  ;;  %v195_v40 = vmax.f32 %v191_v37, 0.0  ;;  %v169_v44 = vmul.f32 %v485_v27, %v86_v29 }
  0x47   :  { %v218_v43 = vmul.f32 1.442695, %v213_v38  ;;  %v109_v15 = vmax.f32 %v105_v6, 0.0  ;;  %v128_v30 = vadd.f32 %v470_v20, %v123_v39 }
  0x48   :  { %v200_v16 = vmul.f32 %v517_v48, %v163_v10  ;;  %v205_v42 = vmul.f32 %v521_v53, %v195_v40 }
  0x49   :  { %297 = vpow2.f32 %v218_v43  ;;  %v132_v45 = vmax.f32 %v128_v30, 0.0  ;;  %v142_v46 = vmul.f32 %v479_v24, %v109_v15  ;;  %v174_v11 = vmul.f32 %v488_v28, %v109_v15 }
  0x4a   :  { %v209_v47 = vadd.f32 %v205_v42, %v200_v16 }
  0x4b   :  { %v146_v49 = vadd.f32 %v142_v46, %v137_v41  ;;  %v151_v21 = vmul.f32 %v482_v25, %v132_v45  ;;  %v178_v50 = vadd.f32 %v174_v11, %v169_v44  ;;  %v183_v51 = vmul.f32 %v496_v33, %v132_v45 }
  0x4c   :  { %v296_v20 = vpop.eup %295  ;;  %v214_v27 = vadd.f32 %v523_v58, %v209_v47 }
  0x4d   :  { %v224_v52 = vadd.f32 1.0, %v296_v20  ;;  %v155_v54 = vadd.f32 %v151_v21, %v146_v49  ;;  %v187_v55 = vadd.f32 %v183_v51, %v178_v50 }
  0x4e   :  { %v220_v56 = vmul.f32 1.442695, %v214_v27 }
  0x4f   :  { %299 = vrcp.f32 %v224_v52  ;;  %v160_v57 = vadd.f32 %v493_v32, %v155_v54  ;;  %v192_v24 = vadd.f32 %v500_v35, %v187_v55 }
  0x50   :  { %301 = vpow2.f32 %v220_v56 }
  0x51   :  { %v164_v28 = vmax.f32 %v160_v57, 0.0  ;;  %v196_v59 = vmax.f32 %v192_v24, 0.0 }
  0x53   :  { %v298_v60 = vpop.eup %297  ;;  %v201_v25 = vmul.f32 %v517_v48, %v164_v28  ;;  %v206_v33 = vmul.f32 %v521_v53, %v196_v59 }
  0x54   :  { %v225_v61 = vadd.f32 1.0, %v298_v60 }
  0x55   :  { %v210_v2 = vadd.f32 %v206_v33, %v201_v25 }
  0x56   :  { %303 = vrcp.f32 %v225_v61 }
  0x57   :  { %v215_v62 = vadd.f32 %v523_v58, %v210_v2 }
  0x59   :  { %v300_v63 = vpop.eup %299  ;;  %v222_v0 = vmul.f32 1.442695, %v215_v62 }
  0x5a   :  { %v302_v1 = vpop.eup %301  ;;  %v236_v4 = vsub.f32 1.0, %v300_v63  ;;  %245 = vst [vmem:[#allocation7 + $0x20] sm:$0xff] %v300_v63 }
  0x5b   :  { %v226_v32 = vadd.f32 1.0, %v302_v1  ;;  %305 = vpow2.f32 %v222_v0 }
  0x5c   :  { %240 = vst [vmem:[#allocation7] sm:$0xff] %v236_v4 }
  0x5d   :  { %307 = vrcp.f32 %v226_v32 }
  0x60   :  { %v304_v35 = vpop.eup %303 }
  0x61   :  { %v237_v3 = vsub.f32 1.0, %v304_v35  ;;  %246 = vst [vmem:[#allocation7 + $0x28] sm:$0xff] %v304_v35 }
  0x63   :  { %241 = vst [vmem:[#allocation7 + $0x8] sm:$0xff] %v237_v3 }
  0x65   :  { %v306_v48 = vpop.eup %305 }
  0x66   :  { %v227_v53 = vadd.f32 1.0, %v306_v48 }
  0x67   :  { %v308_v5 = vpop.eup %307 }
  0x68   :  { %v238_v7 = vsub.f32 1.0, %v308_v5  ;;  %247 = vst [vmem:[#allocation7 + $0x30] sm:$0xff] %v308_v5  ;;  %309 = vrcp.f32 %v227_v53 }
  0x6a   :  { %242 = vst [vmem:[#allocation7 + $0x10] sm:$0xff] %v238_v7 }
  0x72   :  { %v310_v58 = vpop.eup %309 }
  0x73   :  { %v239_v8 = vsub.f32 1.0, %v310_v58  ;;  %248 = vst [vmem:[#allocation7 + $0x38] sm:$0xff] %v310_v58 }
  0x75   :  { %243 = vst [vmem:[#allocation7 + $0x18] sm:$0xff] %v239_v8 }
  0x76   :  { %354 = shalt.err (!%p351_p1)
}
  0x77   :  { %s355_s7 = scalar_lea.hbm %s600_s2, 1024 }
  0x78   :  { %p356_p2 = scmp.ne.s32.totalorder %s600_s2, %s355_s7  ;;  %p359_p3 = scmp.lt.u32.totalorder %s355_s7, %s600_s2 }
  0x7a   :  { %p361_p4 = pnand %p359_p3, %p356_p2 }
  0x7c   :  { %364 = shalt.err (!%p361_p4)
}
  0x7d   :  { %260 = dma.vmem_to_hbm [thread:$0]  %s255_s3, 1024, %s600_s2, [#allocation6], %s373_s28, %s373_s28, %s374_s29  }
  0x7e   :  { %369 = dma.done.wait [#allocation6], 1024  }
  0x7f   :  { %370 = vsyncadd [#allocation6], 4294966272 }
  0x80   :  { %264 = vsyncpa [#allocation5], 1 }
  0x81   :  { %265 = vsyncpa [#allocation6], 1 }

</bundles_post_ra>
